<compile_context>
chip_gen: v5e
topology: v5e:2x2
jax: 0.10.0
libtpu: 0.0.40
codegen_flags: <defaults>
</compile_context>

<pallas_src>
import functools

import jax
import jax.numpy as jnp
from jax import lax
from jax.experimental import pallas as pl
from jax.experimental.pallas import tpu as pltpu


def _common_up_kernel(x_ref, w_ref, scale_ref, bias_ref, o_ref):
    # x_ref    : (1, 4*Cin, HWt)   -- [x, x<<W, x<<H, x<<HW] shifted copies, HW on lanes
    # w_ref    : (4*Cout, 4*Cin)   -- fused per-parity transposed-conv weights
    # scale_ref: (4*Cout, 1)       -- folded BN scale (gamma / sqrt(var+eps)), tiled x4
    # bias_ref : (4*Cout, 1)       -- folded conv-bias + BN bias, tiled x4
    # o_ref    : (1, 4*Cout, HWt)  -- 4 output parities stacked along the row dim
    acc = jnp.dot(w_ref[...], x_ref[0], preferred_element_type=jnp.float32)
    y = acc * scale_ref[...] + bias_ref[...]   # BatchNorm (eval, folded affine)
    y = jnp.where(y >= 0.0, y, 0.2 * y)        # LeakyReLU(0.2)
    o_ref[0] = y.astype(o_ref.dtype)           # Dropout2d is identity in eval


def _pick_hw_tile(hw, max_tile=1024):
    """Largest lane-dense (multiple-of-128) tile that divides HW, capped so
    per-step blocks (x2 for double-buffering) stay well under scoped VMEM on
    all generations."""
    if hw % 128 != 0:
        return hw                      # small / ragged: full-extent block is allowed
    tile = min(hw, max_tile)
    while hw % tile != 0:
        tile -= 128
    return tile


def common_up_forward(x_nchw, w_ct, b_ct, gamma, beta, run_mean, run_var,
                      eps=0.8, max_hw_tile=1024):
    """Forward pass of CommonUp. x_nchw: (N, Cin, H, W) -> (N, Cout, 2H, 2W)."""
    N, Cin, H, W = x_nchw.shape
    Cout = w_ct.shape[1]
    HW = H * W

    # ---- glue: 4 shifted views of the dense input (sub-pixel decomposition) ----
    # out[2m+py, 2p+px] only touches x[m, p], x[m, p+1], x[m+1, p], x[m+1, p+1].
    xp = jnp.pad(x_nchw, ((0, 0), (0, 0), (0, 1), (0, 1)))
    xcat = jnp.concatenate(
        [x_nchw,                        # x00
         xp[:, :, :H, 1:W + 1],         # x01 (shifted by +1 in W, zero at edge)
         xp[:, :, 1:H + 1, :W],         # x10 (shifted by +1 in H)
         xp[:, :, 1:H + 1, 1:W + 1]],   # x11 (both)
        axis=1).reshape(N, 4 * Cin, HW)

    # ---- glue: fuse the ConvTranspose taps into one (4*Cout, 4*Cin) matrix ----
    # Row blocks = output parity [ee, eo, oe, oo]; col blocks = [x00, x01, x10, x11].
    Wt = jnp.transpose(w_ct, (2, 3, 1, 0))      # (ky, kx, Cout, Cin)
    Z = jnp.zeros((Cout, Cin), w_ct.dtype)
    w_big = jnp.concatenate([
        jnp.concatenate([Wt[1, 1], Z,        Z,        Z       ], axis=1),  # (2m,   2p)
        jnp.concatenate([Wt[1, 2], Wt[1, 0], Z,        Z       ], axis=1),  # (2m,   2p+1)
        jnp.concatenate([Wt[2, 1], Z,        Wt[0, 1], Z       ], axis=1),  # (2m+1, 2p)
        jnp.concatenate([Wt[2, 2], Wt[2, 0], Wt[0, 2], Wt[0, 0]], axis=1),  # (2m+1, 2p+1)
    ], axis=0)                                   # (4*Cout, 4*Cin)

    # ---- glue: fold conv bias + BatchNorm (eval) into a per-channel affine ----
    scale = gamma / jnp.sqrt(run_var + eps)                  # (Cout,)
    bias = (b_ct - run_mean) * scale + beta                  # (Cout,)
    scale4 = jnp.tile(scale, 4)[:, None]                     # (4*Cout, 1)
    bias4 = jnp.tile(bias, 4)[:, None]                       # (4*Cout, 1)

    hw_tile = _pick_hw_tile(HW, max_hw_tile)
    grid = (N, HW // hw_tile)

    out_flat = pl.pallas_call(
        _common_up_kernel,
        out_shape=jax.ShapeDtypeStruct((N, 4 * Cout, HW), jnp.float32),
        grid=grid,
        in_specs=[
            pl.BlockSpec((1, 4 * Cin, hw_tile), lambda n, t: (n, 0, t)),
            pl.BlockSpec((4 * Cout, 4 * Cin), lambda n, t: (0, 0)),
            pl.BlockSpec((4 * Cout, 1), lambda n, t: (0, 0)),
            pl.BlockSpec((4 * Cout, 1), lambda n, t: (0, 0)),
        ],
        out_specs=pl.BlockSpec((1, 4 * Cout, hw_tile), lambda n, t: (n, 0, t)),
        compiler_params=pltpu.CompilerParams(
            dimension_semantics=("parallel", "parallel")),
    )(xcat, w_big, scale4, bias4)

    # ---- glue: interleave the 4 parity planes back into NCHW ----
    out = out_flat.reshape(N, 2, 2, Cout, H, W)       # (n, py, px, c, m, p)
    out = jnp.transpose(out, (0, 3, 4, 1, 5, 2))      # (n, c, m, py, p, px)
    return out.reshape(N, Cout, 2 * H, 2 * W)


def _reference_forward(x_nchw, w_ct, b_ct, gamma, beta, run_mean, run_var,
                       eps=0.8):
    """Pure-JAX reference (lax conv with lhs dilation == ConvTranspose2d)."""
    k_ref = jnp.flip(w_ct, axis=(2, 3)).transpose(1, 0, 2, 3)  # (Cout, Cin, 3, 3)
    conv = lax.conv_general_dilated(
        x_nchw, k_ref, window_strides=(1, 1),
        padding=((1, 2), (1, 2)), lhs_dilation=(2, 2), rhs_dilation=(1, 1),
        dimension_numbers=("NCHW", "OIHW", "NCHW"),
        precision=lax.Precision.HIGHEST)
    conv = conv + b_ct[None, :, None, None]
    bn = (conv - run_mean[None, :, None, None]) / jnp.sqrt(
        run_var[None, :, None, None] + eps)
    bn = bn * gamma[None, :, None, None] + beta[None, :, None, None]
    return jnp.where(bn >= 0.0, bn, 0.2 * bn)


if __name__ == "__main__":
    N, Cin, Cout, H, W = 2, 4, 8, 16, 16

    key = jax.random.PRNGKey(0)
    k_x, k_w, k_b, k_g, k_bt = jax.random.split(key, 5)

    x = jax.random.normal(k_x, (N, Cin, H, W), jnp.float32)
    # ConvTranspose2d weight shape: (in_channels, out_channels, 3, 3)
    w_ct = 0.1 * jax.random.normal(k_w, (Cin, Cout, 3, 3), jnp.float32)
    b_ct = 0.1 * jax.random.normal(k_b, (Cout,), jnp.float32)
    # BatchNorm2d(out_channels, eps=0.8) parameters / running stats (eval defaults)
    gamma = 1.0 + 0.1 * jax.random.normal(k_g, (Cout,), jnp.float32)
    beta = 0.1 * jax.random.normal(k_bt, (Cout,), jnp.float32)
    run_mean = jnp.zeros((Cout,), jnp.float32)
    run_var = jnp.ones((Cout,), jnp.float32)

    # max_hw_tile=128 so the HW grid axis has >1 step at this toy size (exercises tiling).
    fwd = jax.jit(functools.partial(common_up_forward, eps=0.8, max_hw_tile=128))
    out = fwd(x, w_ct, b_ct, gamma, beta, run_mean, run_var)
    out = jax.block_until_ready(out)

    ref = _reference_forward(x, w_ct, b_ct, gamma, beta, run_mean, run_var)
    assert out.shape == (N, Cout, 2 * H, 2 * W), out.shape
    assert jnp.allclose(out, ref, atol=1e-2, rtol=1e-2), float(
        jnp.max(jnp.abs(out - ref)))

    print("KERNEL_OK")
</pallas_src>

<mosaic_0001>
module attributes {stable_mosaic.version = 11 : i64} {
  func.func @_common_up_kernel(%arg0: i32, %arg1: i32, %arg2: memref<1x16x128xf32, #tpu.memory_space<vmem>>, %arg3: memref<32x16xf32, #tpu.memory_space<vmem>>, %arg4: memref<32x1xf32, #tpu.memory_space<vmem>>, %arg5: memref<32x1xf32, #tpu.memory_space<vmem>>, %arg6: memref<1x32x128xf32, #tpu.memory_space<vmem>>) attributes {dimension_semantics = [#tpu.dimension_semantics<parallel>, #tpu.dimension_semantics<parallel>], iteration_bounds = array<i64: 2, 2>, scalar_prefetch = 0 : i64, scratch_operands = 0 : i64, tpu.core_type = #tpu.core_type<tc>, window_params = [{transform_indices = @transform_0, window_bounds = array<i64: 1, 16, 128>}, {pipeline_mode = #tpu.pipeline_mode<synchronous>, transform_indices = @transform_1, window_bounds = array<i64: 32, 16>}, {pipeline_mode = #tpu.pipeline_mode<synchronous>, transform_indices = @transform_2, window_bounds = array<i64: 32, 1>}, {pipeline_mode = #tpu.pipeline_mode<synchronous>, transform_indices = @transform_3, window_bounds = array<i64: 32, 1>}, {transform_indices = @transform_4, window_bounds = array<i64: 1, 32, 128>}]} {
    %c0 = arith.constant 0 : index
    %c0_0 = arith.constant 0 : index
    %0 = vector.load %arg3[%c0, %c0_0] : memref<32x16xf32, #tpu.memory_space<vmem>>, vector<32x16xf32>
    %c0_1 = arith.constant 0 : index
    %c0_2 = arith.constant 0 : index
    %c0_3 = arith.constant 0 : index
    %1 = vector.load %arg2[%c0_1, %c0_2, %c0_3] : memref<1x16x128xf32, #tpu.memory_space<vmem>>, vector<1x16x128xf32>
    %2 = vector.shape_cast %1 : vector<1x16x128xf32> to vector<16x128xf32>
    %cst = arith.constant dense<0.000000e+00> : vector<32x128xf32>
    %3 = tpu.matmul %0, %2, %cst {dimension_numbers = #tpu.dot_dimension_numbers<[1], [0], [0], [1], [0, 0, 1, 1], [], []>} : vector<32x16xf32>, vector<16x128xf32>, vector<32x128xf32> -> vector<32x128xf32>
    %c0_4 = arith.constant 0 : index
    %c0_5 = arith.constant 0 : index
    %4 = vector.load %arg4[%c0_4, %c0_5] : memref<32x1xf32, #tpu.memory_space<vmem>>, vector<32x1xf32>
    %5 = vector.broadcast %4 : vector<32x1xf32> to vector<32x128xf32>
    %6 = arith.mulf %3, %5 : vector<32x128xf32>
    %c0_6 = arith.constant 0 : index
    %c0_7 = arith.constant 0 : index
    %7 = vector.load %arg5[%c0_6, %c0_7] : memref<32x1xf32, #tpu.memory_space<vmem>>, vector<32x1xf32>
    %8 = vector.broadcast %7 : vector<32x1xf32> to vector<32x128xf32>
    %9 = arith.addf %6, %8 : vector<32x128xf32>
    %cst_8 = arith.constant 0.000000e+00 : f32
    %10 = vector.broadcast %cst_8 : f32 to vector<32x128xf32>
    %11 = arith.cmpf oge, %9, %10 : vector<32x128xf32>
    %cst_9 = arith.constant 2.000000e-01 : f32
    %12 = vector.broadcast %cst_9 : f32 to vector<32x128xf32>
    %13 = arith.mulf %12, %9 : vector<32x128xf32>
    %14 = arith.select %11, %9, %13 : vector<32x128xi1>, vector<32x128xf32>
    %c0_10 = arith.constant 0 : index
    %c0_11 = arith.constant 0 : index
    %c0_12 = arith.constant 0 : index
    %15 = vector.load %arg6[%c0_10, %c0_11, %c0_12] : memref<1x32x128xf32, #tpu.memory_space<vmem>>, vector<1x32x128xf32>
    %16 = vector.shape_cast %15 : vector<1x32x128xf32> to vector<32x128xf32>
    %17 = vector.shape_cast %14 : vector<32x128xf32> to vector<1x32x128xf32>
    tpu.vector_store %arg6[%c0_10, %c0_11, %c0_12], %17 {strides = array<i32>} : memref<1x32x128xf32, #tpu.memory_space<vmem>>, vector<1x32x128xf32>,
    return
  }
  func.func @transform_0(%arg0: i32, %arg1: i32) -> (i32, i32, i32) {
    %c0_i32 = arith.constant 0 : i32
    %c0_i32_0 = arith.constant 0 : i32
    return %arg0, %c0_i32, %arg1 : i32, i32, i32
  }
  func.func @transform_1(%arg0: i32, %arg1: i32) -> (i32, i32) {
    %c0_i32 = arith.constant 0 : i32
    %c0_i32_0 = arith.constant 0 : i32
    %c0_i32_1 = arith.constant 0 : i32
    return %c0_i32, %c0_i32_0 : i32, i32
  }
  func.func @transform_2(%arg0: i32, %arg1: i32) -> (i32, i32) {
    %c0_i32 = arith.constant 0 : i32
    %c0_i32_0 = arith.constant 0 : i32
    %c0_i32_1 = arith.constant 0 : i32
    return %c0_i32, %c0_i32_0 : i32, i32
  }
  func.func @transform_3(%arg0: i32, %arg1: i32) -> (i32, i32) {
    %c0_i32 = arith.constant 0 : i32
    %c0_i32_0 = arith.constant 0 : i32
    %c0_i32_1 = arith.constant 0 : i32
    return %c0_i32, %c0_i32_0 : i32, i32
  }
  func.func @transform_4(%arg0: i32, %arg1: i32) -> (i32, i32, i32) {
    %c0_i32 = arith.constant 0 : i32
    %c0_i32_0 = arith.constant 0 : i32
    return %arg0, %c0_i32, %arg1 : i32, i32, i32
  }
}

</mosaic_0001>

<bundles_post_ra>
// kernel: tile.18
= control target key start
LH: loop header
LB: loop body
LE: loop exit
PB: predicated region body
PF: predicated region fallthrough
CT: control target
= control target key end

     0   :  { %s22_s0 = inlined_call_operand.vmem [shape: f32[8], index: 0, kind: input, shape index: {}]   ;;  %s23_s1 = inlined_call_operand.vmem [shape: f32[4,8], index: 1, kind: output, shape index: {}]  }
   0x1   :  { %v4_v0 = vld [vmem:[%s22_s0] ss:$0 sm:$0xff] }
   0x2   :  { %5 = vst [vmem:[%s23_s1] sm:$0xf] %v4_v0 }

// kernel: tile.0
= control target key start
LH: loop header
LB: loop body
LE: loop exit
PB: predicated region body
PF: predicated region fallthrough
CT: control target
= control target key end

     0   :  { %s66_s8 = smov 125   ;;  %s67_s9 = smov 123   ;;  %vm7_vm0 = vcmask 7168   ;;  %s117_s0 = inlined_call_operand.vmem [shape: f32[4,8], index: 0, kind: input, shape index: {}]   ;;  %s118_s1 = inlined_call_operand.vmem [shape: f32[32,1], index: 1, kind: output, shape index: {}]  }
   0x1   :  { %v4_v0 = vld [vmem:[%s117_s0] sm:$0xf]  ;;  %s65_s0 = smov 127   ;;  %s68_s10 = smov 126  }
   0x2   :  { %5 = vst [vmem:[#allocation0] sm:$0xf] %v4_v0  ;;  %s69_s11 = smov 124   ;;  %s70_s12 = smov 122  }
   0x3   :  { %s71_s13 = smov 121  }
   0x9   :  { %v9_v1 = vld [vmem:[#allocation0] sm:$0xf]  }
   0xa   :  { %v21_v2 = vld [vmem:[#allocation0] sm:$0xf]   ;;  %10 = vrot.lane.b32.xlu0 %v9_v1, %s65_s0 }
   0xb   :  { %22 = vrot.lane.b32.xlu1 %v21_v2, %s66_s8  ;;  %v33_v3 = vld [vmem:[#allocation0] sm:$0xf]  }
   0xc   :  { %34 = vrot.lane.b32.xlu2 %v33_v3, %s67_s9  ;;  %v15_v4 = vld [vmem:[#allocation0] sm:$0xf]  }
   0xd   :  { %v27_v5 = vld [vmem:[#allocation0] sm:$0xf]  }
   0xe   :  { %v39_v6 = vld [vmem:[#allocation0] sm:$0xf]  }
   0xf   :  { %v45_v7 = vld [vmem:[#allocation0] sm:$0xf]  }
  0x10   :  { %v6_v8 = vld [vmem:[#allocation0] sm:$0xf]  }
  0x11   :  { %8 = vst.msk [vmem:[%s118_s1] ss:$8 sm:$0xf] %vm7_vm0, %v6_v8  }
  0x12   :  { %16 = vrot.lane.b32.xlu0 %v15_v4, %s68_s10 }
  0x13   :  { %28 = vrot.lane.b32.xlu1 %v27_v5, %s69_s11 }
  0x14   :  { %40 = vrot.lane.b32.xlu2 %v39_v6, %s70_s12 }
  0x1a   :  { %46 = vrot.lane.b32.xlu0 %v45_v7, %s71_s13 }
  0x66   :  { %v35_v9 = vpop.permute.xlu2 %34  }
  0x67   :  { %55 = vst.msk [vmem:[%s118_s1 + $0x5] ss:$8 sm:$0xf] %vm7_vm0, %v35_v9  }
  0x6e   :  { %v41_v10 = vpop.permute.xlu2 %40  }
  0x6f   :  { %56 = vst.msk [vmem:[%s118_s1 + $0x6] ss:$8 sm:$0xf] %vm7_vm0, %v41_v10  }
  0x7c   :  { %v11_v11 = vpop.permute.xlu0 %10  }
  0x7d   :  { %v23_v12 = vpop.permute.xlu1 %22   ;;  %51 = vst.msk [vmem:[%s118_s1 + $0x1] ss:$8 sm:$0xf] %vm7_vm0, %v11_v11  }
  0x7e   :  { %53 = vst.msk [vmem:[%s118_s1 + $0x3] ss:$8 sm:$0xf] %vm7_vm0, %v23_v12  }
  0x84   :  { %v17_v13 = vpop.permute.xlu0 %16  }
  0x85   :  { %v29_v14 = vpop.permute.xlu1 %28   ;;  %52 = vst.msk [vmem:[%s118_s1 + $0x2] ss:$8 sm:$0xf] %vm7_vm0, %v17_v13  }
  0x86   :  { %54 = vst.msk [vmem:[%s118_s1 + $0x4] ss:$8 sm:$0xf] %vm7_vm0, %v29_v14  }
  0x8c   :  { %v47_v15 = vpop.permute.xlu0 %46  }
  0x8d   :  { %57 = vst.msk [vmem:[%s118_s1 + $0x7] ss:$8 sm:$0xf] %vm7_vm0, %v47_v15  }

// kernel: common_up_forward.1
= control target key start
LH: loop header
LB: loop body
LE: loop exit
PB: predicated region body
PF: predicated region fallthrough
CT: control target
= control target key end

     0   :  { %s664_s15 = smov 0   ;;  %s666_s16 = smov 0   ;;  %s800_s0 = inlined_call_operand.vmem [shape: f32[2,16,256], index: 0, kind: input, shape index: {}]   ;;  %s801_s1 = inlined_call_operand.vmem [shape: f32[32,16], index: 1, kind: input, shape index: {}]   ;;  %s802_s2 = inlined_call_operand.vmem [shape: f32[32,1], index: 2, kind: input, shape index: {}]   ;;  %s803_s3 = inlined_call_operand.vmem [shape: f32[32,1], index: 3, kind: input, shape index: {}]   ;;  %s804_s4 = inlined_call_operand.vmem [shape: f32[2,32,256], index: 4, kind: output, shape index: {}]  }
   0x1   :  { %s668_s17 = smov 0   ;;  %s670_s18 = smov 0  }
   0x2   :  { %s672_s19 = smov 0   ;;  %s674_s20 = smov 0  }
   0x3   :  { %s676_s21 = smov 0  }
   0x4 LB: > { %s23_s22 = sadd.s32 1, %s628_s19  ;;  %s26_s23 = sadd.s32 1, %s632_s20  ;;  %s636_s21 = sphi %s676_s21, %s14_s21   ;;  %s632_s20 = sphi %s674_s20, %s811_s20   ;;  %s628_s19 = sphi %s672_s19, %s810_s19   ;;  %s624_s18 = sphi %s670_s18, %s809_s18   ;;  %s620_s17 = sphi %s668_s17, %s808_s17   ;;  %s616_s16 = sphi %s666_s16, %s807_s16   ;;  %s612_s15 = sphi %s664_s15, %s806_s15  }
   0x5   : > { %p24_p0 = scmp.ge.s32.totalorder %s23_s22, 2  ;;  %s497_s24 = sadd.s32 4294967295, %s636_s21  }
   0x6   : > { %p42_p1 = scmp.ne.s32.totalorder %s616_s16, %s612_s15  ;;  %p43_p2 = scmp.eq.s32.totalorder %s636_s21, 0 }
   0x7   : > { %s813_s22 = smov (%p24_p0, %s23_s22), 0  ;;  %s815_s23 = smov (!%p24_p0, %s26_s23), %s632_s20 }
   0x8   : > { %p28_p3 = scmp.ge.s32.totalorder %s815_s23, 2  ;;  %p137_p4 = scmp.eq.s32.totalorder %s497_s24, 3 }
   0x9   : > { %s31_s25 = ssub.s32 %s628_s19, %s813_s22  ;;  %p44_p5 = por %p43_p2, %p42_p1 }
   0xa   : > { %s817_s23 = smov (%p28_p3, %s815_s23), 0  ;;  %p712_p6 = por %p137_p4, %p42_p1 }
   0xb   : > { %s30_s27 = ssub.s32 %s632_s20, %s817_s23  ;;  %s35_s29 = sadd.s32 1, %s616_s16 }
   0xc   : > { %s32_s28 = sor.u32 %s31_s25, %s30_s27  ;;  %p500_p8 = scmp.ge.s32.totalorder %s636_s21, 4 }
   0xd   : > { %p33_p7 = scmp.eq.s32.totalorder %s32_s28, 0 }
   0xe   : > { %168 = sbr.rel (%p500_p8) target bundleno = 27 (0x1b), region = 28 }
   0xf   : > { %s720_s30 = scalar_select %p33_p7, %s616_s16, %s35_s29  }
  0x13   : > { %171 = sbr.rel (!%p44_p5) target bundleno = 27 (0x1b), region = 32  ;;  %s173_s5 = sand.u32 (%p44_p5), 1, %s616_s16  }
  0x14   : > { %s502_s6 = sshll.u32 (%p44_p5), %s632_s20, 2  ;;  %s501_s7 = sshll.u32 (%p44_p5), %s173_s5, 4 }
  0x15   : > { %s177_s8 = sadd.s32 (%p44_p5), %s628_s19, %s502_s6  ;;  %s175_s13 = scalar_lea.vmem (%p44_p5), [#allocation2], %s501_s7 }
  0x16   : > { %s503_s9 = sshll.u32 (%p44_p5), %s177_s8, 3 }
  0x17   : > { %s179_s12 = scalar_lea.vmem (%p44_p5), %s800_s0, %s503_s9 }
  0x18   : > { %v210_v0 = vld [vmem:[%s179_s12] sm:$0xff]  ;;  %v212_v1 = vld [vmem:[%s179_s12 + $0x10] sm:$0xff] }
  0x19   : > { %211 = vst [vmem:[%s175_s13] sm:$0xff] %v210_v0 }
  0x1a   : > { %213 = vst [vmem:[%s175_s13 + $0x8] sm:$0xff] %v212_v1 }
  0x1b PF: > { %p504_p9 = scmp.ge.s32.totalorder %s636_s21, 1  ;;  %p218_p10 = scmp.lt.s32.totalorder %s636_s21, 5 }
  0x1d   : > { %p219_p11 = pnand %p504_p9, %p218_p10 }
  0x1e   : > { %s225_s28 = sand.u32 (!%p219_p11), 1, %s612_s15  }
  0x1f   : > { %222 = sbr.rel (%p219_p11) target bundleno = 193 (0xc1), region = 70  ;;  %s505_s29 = sshll.u32 (!%p219_p11), %s225_s28, 4 }
  0x20   : > { %s227_s5 = scalar_lea.vmem (!%p219_p11), [#allocation2], %s505_s29  ;;  %s506_s12 = sshll.u32 (!%p219_p11), %s225_s28, 5 }
  0x21   : > { %s248_s13 = scalar_lea.vmem (!%p219_p11), [#allocation3], %s506_s12 }
  0x24   : > { %v299_v2 = vld [vmem:[%s802_s2 + $0x10] sm:$0xff]  ;;  %v297_v3 = vld [vmem:[%s802_s2] sm:$0xff]  ;;  %v638_v4 = vmov 0   ;;  %v254_v5 = vld [vmem:[%s227_s5 + $0x8] sm:$0xff]  ;;  %vm255_vm0 = vcmask 130048   ;;  %s512_s15 = sshll.u32 (%p712_p6), %s624_s18, 3 }
  0x25   : > { %580 = vset.pattern.permute.xlu1 %v638_v4  ;;  %579 = vset.pattern.permute.xlu0 %v638_v4  ;;  %v253_v6 = vld [vmem:[%s227_s5] sm:$0xff]  ;;  %v250_v8 = vld [vmem:[%s801_s1 + $0x8] sm:$0xff]  ;;  %v252_v10 = vld [vmem:[%s801_s1 + $0x18] sm:$0xff]  ;;  %s377_s28 = sadd.s32 (%p712_p6), %s620_s17, %s512_s15 }
  0x26   : > { %313 = vperm.xlu1 %580, %v299_v2   ;;  %303 = vperm.xlu0 %579, %v297_v3   ;;  %v249_v7 = vld [vmem:[%s801_s1] sm:$0xff]  ;;  %v251_v9 = vld [vmem:[%s801_s1 + $0x10] sm:$0xff]  ;;  %v300_v11 = vld [vmem:[%s802_s2 + $0x18] sm:$0xff]  ;;  %s513_s14 = sshll.u32 (%p712_p6), %s377_s28, 3 }
  0x27   : > { %581 = vset.pattern.permute.xlu2 %v638_v4  ;;  %282 = vmatpush.msra.mxu0 %v254_v5  ;;  %v298_v12 = vld [vmem:[%s802_s2 + $0x8] sm:$0xff]  ;;  %v325_v13 = vld [vmem:[%s803_s3] sm:$0xff]  ;;  %v328_v14 = vld [vmem:[%s803_s3 + $0x18] sm:$0xff]  ;;  %s379_s27 = scalar_lea.vmem (%p712_p6), %s804_s4, %s513_s14 }
  0x28   : > { %516 = vmatpush.msra.mxu1 %v254_v5  ;;  %517 = vmatpush.msra.mxu2 %v254_v5  ;;  %v327_v15 = vld [vmem:[%s803_s3 + $0x10] sm:$0xff]  ;;  %v326_v16 = vld [vmem:[%s803_s3 + $0x8] sm:$0xff] }
  0x29   : > { %518 = vmatpush.msra.mxu3 %v254_v5  ;;  %283 = vmatpush.msra.mxu0 %v253_v6 }
  0x2a   : > { %519 = vmatpush.msra.mxu1 %v253_v6  ;;  %520 = vmatpush.msra.mxu2 %v253_v6 }
  0x2b   : > { %521 = vmatpush.msra.mxu3 %v253_v6  ;;  %507 = vmatmul.msk.f32.vlgmr.msra.gmra.mxu0 %vm255_vm0, %v249_v7 }
  0x2c   : > { %508 = vmatmul.msk.f32.vlgmr.msra.gmra.mxu1 %vm255_vm0, %v250_v8  ;;  %509 = vmatmul.msk.f32.vlgmr.msra.gmra.mxu2 %vm255_vm0, %v251_v9 }
  0x2d   : > { %510 = vmatmul.msk.f32.vlgmr.msra.gmra.mxu3 %vm255_vm0, %v252_v10  ;;  %331 = vperm.xlu2 %581, %v325_v13  }
  0x2e   : > { %318 = vperm.xlu1 %580, %v300_v11   ;;  %308 = vperm.xlu0 %579, %v298_v12  }
  0x35   : > { %336 = vperm.xlu2 %581, %v326_v16  }
  0x36   : > { %346 = vperm.xlu1 %580, %v328_v14   ;;  %341 = vperm.xlu0 %579, %v327_v15  }
  0x87   : > { %v332_v19 = vpop.permute.xlu2 %331 }
  0x8f   : > { %v337_v26 = vpop.permute.xlu2 %336 }
  0x98   : > { %v314_v17 = vpop.permute.xlu1 %313  ;;  %v304_v18 = vpop.permute.xlu0 %303 }
  0xa0   : > { %v319_v20 = vpop.permute.xlu1 %318  ;;  %v309_v21 = vpop.permute.xlu0 %308 }
  0xa8   : > { %v285_v22 = vpop.f32.mrf.mxu0  ;;  %v347_v37 = vpop.permute.xlu1 %346 }
  0xa9   : > { %v288_v23 = vpop.f32.mrf.mxu1  ;;  %v321_v24 = vmul.f32 %v304_v18, %v285_v22  ;;  %v342_v38 = vpop.permute.xlu0 %341 }
  0xaa   : > { %v322_v25 = vmul.f32 %v309_v21, %v288_v23 }
  0xab   : > { %v349_v27 = vadd.f32 %v332_v19, %v321_v24 }
  0xac   : > { %v350_v28 = vadd.f32 %v337_v26, %v322_v25 }
  0xad   : > { %vm353_vm1 = vcmp.ge.f32.partialorder %v349_v27, 0.0  ;;  %v357_v29 = vmul.f32 0.2, %v349_v27 }
  0xae   : > { %vm354_vm2 = vcmp.ge.f32.partialorder %v350_v28, 0.0  ;;  %v358_v30 = vmul.f32 0.2, %v350_v28 }
  0xaf   : > { %v361_v31 = vsel %vm353_vm1, %v349_v27, %v357_v29  ;;  %v291_v33 = vpop.f32.mrf.mxu2 }
  0xb0   : > { %v362_v32 = vsel %vm354_vm2, %v350_v28, %v358_v30  ;;  %v294_v34 = vpop.f32.mrf.mxu3  ;;  %365 = vst [vmem:[%s248_s13] sm:$0xff] %v361_v31  ;;  %v323_v35 = vmul.f32 %v314_v17, %v291_v33 }
  0xb1   : > { %v324_v36 = vmul.f32 %v319_v20, %v294_v34  ;;  %366 = vst [vmem:[%s248_s13 + $0x8] sm:$0xff] %v362_v32 }
  0xb2   : > { %v351_v39 = vadd.f32 %v342_v38, %v323_v35 }
  0xb3   : > { %v352_v40 = vadd.f32 %v347_v37, %v324_v36 }
  0xb4   : > { %vm355_vm3 = vcmp.ge.f32.partialorder %v351_v39, 0.0  ;;  %v359_v41 = vmul.f32 0.2, %v351_v39  ;;  %375 = sbr.rel (!%p712_p6) target bundleno = 193 (0xc1), region = 78 }
  0xb5   : > { %vm356_vm4 = vcmp.ge.f32.partialorder %v352_v40, 0.0  ;;  %v360_v42 = vmul.f32 0.2, %v352_v40 }
  0xb6   : > { %v363_v43 = vsel %vm355_vm3, %v351_v39, %v359_v41 }
  0xb7   : > { %v364_v44 = vsel %vm356_vm4, %v352_v40, %v360_v42  ;;  %367 = vst [vmem:[%s248_s13 + $0x10] sm:$0xff] %v363_v43  ;;  %v414_v45 = vld [vmem:[%s248_s13] sm:$0xff] (%p712_p6) }
  0xb8   : > { %368 = vst [vmem:[%s248_s13 + $0x18] sm:$0xff] %v364_v44  ;;  %v416_v46 = vld [vmem:[%s248_s13 + $0x8] sm:$0xff] (%p712_p6) }
  0xb9   : > { %415 = vst [vmem:[%s379_s27] sm:$0xff] %v414_v45 }
  0xba   : > { %417 = vst [vmem:[%s379_s27 + $0x10] sm:$0xff] %v416_v46 }
  0xbe   : > { %v418_v47 = vld [vmem:[%s248_s13 + $0x10] sm:$0xff] }
  0xbf   : > { %v420_v48 = vld [vmem:[%s248_s13 + $0x18] sm:$0xff]  ;;  %419 = vst [vmem:[%s379_s27 + $0x20] sm:$0xff] %v418_v47 }
  0xc0   : > { %421 = vst [vmem:[%s379_s27 + $0x30] sm:$0xff] %v420_v48 }
  0xc1 PF: > { %s14_s21 = sadd.s32 1, %s636_s21   ;;  %s806_s15 = smov %s616_s16 }
  0xc2   : > { %p11_p12 = scmp.ge.s32.totalorder %s14_s21, 6   ;;  %s807_s16 = smov %s720_s30 }
  0xc3   : > { %s808_s17 = smov %s628_s19  ;;  %s809_s18 = smov %s632_s20 }
  0xc4   : > { %s810_s19 = smov %s813_s22  ;;  %s811_s20 = smov %s817_s23 }
  0xc5   :  { %13 = sbr.rel (!%p11_p12) target bundleno = 4 (0x4), region = 147 }

</bundles_post_ra>
